<compile_context>
chip_gen: v7x
topology: tpu7x:2x2x1
jax: 0.10.0
libtpu: 0.0.40
codegen_flags: <defaults>
</compile_context>

<pallas_src>
import math
from functools import partial

import jax
import jax.numpy as jnp
from jax import lax
from jax.experimental import pallas as pl
from jax.experimental.pallas import tpu as pltpu


def _decomp_kernel(x_ref, res_ref, mean_ref, *, kernel_size, seq_len, use_unrolled):
    # x_ref block: (S, tn) -- sequence on sublanes, node_cnt on lanes.  Each
    # lane (column) is an independent series, so sublane rolls never mix
    # series.  The masks below also make K >= S (fully clipped windows) exact.
    x = x_ref[...]
    xf = x.astype(jnp.float32)
    S = seq_len
    pad = (kernel_size - 1) // 2
    seq_axis = 0  # sublane axis (non-negative: pltpu.roll rejects negative axes)

    seq = lax.broadcasted_iota(jnp.int32, xf.shape, dimension=seq_axis)
    first = xf[0:1, :]          # (1, tn): x[0]   -- broadcasts implicitly
    last = xf[S - 1:S, :]       # (1, tn): x[S-1] -- broadcasts implicitly

    if pad == 0:
        acc = xf
    elif use_unrolled:
        # Static unrolled roll-accumulate: rolls on the XLU, adds/selects on the VPU.
        acc = xf
        for s in range(1, pad + 1):
            fwd = pltpu.roll(xf, shift=(S - s) % S, axis=seq_axis)  # fwd[j] = x[j + s] (wrapped)
            fwd = jnp.where(seq >= S - s, last, fwd)                # replicate right edge
            bwd = pltpu.roll(xf, shift=s % S, axis=seq_axis)        # bwd[j] = x[j - s] (wrapped)
            bwd = jnp.where(seq < s, first, bwd)                    # replicate left edge
            acc = acc + fwd + bwd
    else:
        # Prefix-sum formulation:
        #   K * mean[j] = C[min(S-1, j+pad)] - C[j-pad-1]
        #               + (#front-clipped)*x[0] + (#back-clipped)*x[S-1]
        # Inclusive cumsum along the sequence via Hillis-Steele scan (O(log S) rolls).
        csum = xf
        offset = 1
        while offset < S:
            shifted = pltpu.roll(csum, shift=offset, axis=seq_axis)
            csum = csum + jnp.where(seq >= offset, shifted, 0.0)
            offset *= 2
        total = csum[S - 1:S, :]                                    # (1, tn): C[S-1]
        upper = pltpu.roll(csum, shift=(S - pad) % S, axis=seq_axis)  # C[j + pad] (wrapped)
        upper = jnp.where(seq >= S - pad, total, upper)
        lower = pltpu.roll(csum, shift=(pad + 1) % S, axis=seq_axis)  # C[j - pad - 1] (wrapped)
        lower = jnp.where(seq < pad + 1, 0.0, lower)
        n_front = jnp.maximum(pad - seq, 0).astype(jnp.float32)
        n_back = jnp.maximum(seq + (pad - (S - 1)), 0).astype(jnp.float32)
        acc = (upper - lower) + n_front * first + n_back * last

    mean = (acc * jnp.float32(1.0 / kernel_size)).astype(x.dtype)
    mean_ref[...] = mean
    res_ref[...] = x - mean


def decomposition_layer(x, kernel_size):
    """x: (B, S, N). Returns (res, moving_mean), each (B, S, N)."""
    B, S, N = x.shape
    assert kernel_size % 2 == 1, (
        "DecompositionLayer requires odd kernel_size so the moving average "
        "preserves the sequence length (as the PyTorch module assumes)."
    )
    pad = (kernel_size - 1) // 2
    itemsize = jnp.dtype(x.dtype).itemsize

    # Lane tile over node_cnt: full N when modest, 512-lane chunks otherwise
    # (multiple of 128 -> legal block dim; keeps tiles ~<=2 MiB even for long
    # sequences, within the v7x 64 MiB-per-TC VMEM budget).
    tn = N if N <= 512 else 512
    grid = (B, pl.cdiv(N, tn))

    # Path selection: unrolled path does 2*pad sublane rolls, prefix path does
    # ~ceil(log2 S) + 2 -> pick whichever needs fewer rolls.
    log2_s = max(1, math.ceil(math.log2(max(2, S))))
    use_unrolled = (2 * pad) <= (log2_s + 2)

    kernel = partial(
        _decomp_kernel,
        kernel_size=kernel_size,
        seq_len=S,
        use_unrolled=use_unrolled,
    )
    # Batch dim squeezed out of the block -> kernel sees a 2-D (S, tn) tile.
    block = pl.BlockSpec((None, S, tn), lambda b, n: (b, 0, n))

    out_shape = (
        jax.ShapeDtypeStruct((B, S, N), x.dtype),   # res
        jax.ShapeDtypeStruct((B, S, N), x.dtype),   # moving_mean
    )
    flops_per_elem = (2 * pad + 2) if use_unrolled else (2 * log2_s + 8)

    res, moving_mean = pl.pallas_call(
        kernel,
        out_shape=out_shape,
        grid=grid,
        in_specs=[block],
        out_specs=(block, block),
        compiler_params=pltpu.CompilerParams(
            dimension_semantics=("parallel", "parallel"),
            vmem_limit_bytes=48 * 1024 * 1024,
        ),
        cost_estimate=pl.CostEstimate(
            flops=flops_per_elem * B * S * N,
            transcendentals=0,
            bytes_accessed=3 * B * S * N * itemsize,
        ),
    )(x)
    return res, moving_mean


def _reference(x, kernel_size):
    # Pure-JAX reference mirroring the PyTorch forward.
    pad = (kernel_size - 1) // 2
    front = jnp.repeat(x[:, 0:1, :], pad, axis=1)
    end = jnp.repeat(x[:, -1:, :], pad, axis=1)
    xp = jnp.concatenate([front, x, end], axis=1)
    S = x.shape[1]
    windows = jnp.stack([xp[:, i:i + S, :] for i in range(kernel_size)], axis=0)
    mean = jnp.mean(windows, axis=0)
    return x - mean, mean


if __name__ == "__main__":
    key = jax.random.PRNGKey(0)

    # (B, S, N, kernel sizes) -- exercises both the unrolled path (small K)
    # and the prefix-sum path (large K), plus a non-aligned S/N case.
    cases = [
        ((2, 128, 8), (5, 25)),
        ((3, 96, 7), (7, 31)),
    ]

    for shape, kernel_sizes in cases:
        B, S, N = shape
        key, sub = jax.random.split(key)
        x = jax.random.normal(sub, (B, S, N), dtype=jnp.float32)
        for kernel_size in kernel_sizes:
            res, moving_mean = decomposition_layer(x, kernel_size)
            res = jax.block_until_ready(res)
            moving_mean = jax.block_until_ready(moving_mean)

            res_ref, mean_ref = _reference(x, kernel_size)
            assert jnp.allclose(moving_mean, mean_ref, atol=1e-4, rtol=1e-5), (
                f"moving-mean mismatch (shape={shape}, K={kernel_size})"
            )
            assert jnp.allclose(res, res_ref, atol=1e-4, rtol=1e-5), (
                f"residual mismatch (shape={shape}, K={kernel_size})"
            )

    print("KERNEL_OK")
</pallas_src>

<mosaic_0001>
module attributes {stable_mosaic.version = 11 : i64} {
  func.func @_decomp_kernel(%arg0: i32, %arg1: i32, %arg2: memref<1x128x8xf32, #tpu.memory_space<vmem>>, %arg3: memref<1x128x8xf32, #tpu.memory_space<vmem>>, %arg4: memref<1x128x8xf32, #tpu.memory_space<vmem>>) attributes {dimension_semantics = [#tpu.dimension_semantics<parallel>, #tpu.dimension_semantics<parallel>], iteration_bounds = array<i64: 2, 1>, scalar_prefetch = 0 : i64, scratch_operands = 0 : i64, tpu.core_type = #tpu.core_type<tc>, window_params = [{transform_indices = @transform_0, window_bounds = array<i64: 1, 128, 8>}, {transform_indices = @transform_1, window_bounds = array<i64: 1, 128, 8>}, {transform_indices = @transform_2, window_bounds = array<i64: 1, 128, 8>}]} {
    %c0 = arith.constant 0 : index
    %c0_0 = arith.constant 0 : index
    %c0_1 = arith.constant 0 : index
    %0 = vector.load %arg2[%c0, %c0_0, %c0_1] : memref<1x128x8xf32, #tpu.memory_space<vmem>>, vector<1x128x8xf32>
    %1 = vector.shape_cast %0 : vector<1x128x8xf32> to vector<128x8xf32>
    %2 = tpu.iota {dimensions = array<i32: 0>} : vector<128x8xi32>
    %3 = vector.extract_strided_slice %1 {offsets = [0, 0], sizes = [1, 8], strides = [1, 1]} : vector<128x8xf32> to vector<1x8xf32>
    %4 = vector.extract_strided_slice %1 {offsets = [127, 0], sizes = [1, 8], strides = [1, 1]} : vector<128x8xf32> to vector<1x8xf32>
    %c127_i32 = arith.constant 127 : i32
    %5 = tpu.dynamic_rotate %1 by %c127_i32 dim 0 : vector<128x8xf32>, i32 -> vector<128x8xf32>
    %c127_i32_2 = arith.constant 127 : i32
    %6 = vector.broadcast %c127_i32_2 : i32 to vector<128x8xi32>
    %7 = arith.cmpi sge, %2, %6 : vector<128x8xi32>
    %8 = vector.shape_cast %4 : vector<1x8xf32> to vector<1x8xf32>
    %9 = vector.broadcast %8 : vector<1x8xf32> to vector<128x8xf32>
    %10 = arith.select %7, %9, %5 : vector<128x8xi1>, vector<128x8xf32>
    %c1_i32 = arith.constant 1 : i32
    %11 = tpu.dynamic_rotate %1 by %c1_i32 dim 0 : vector<128x8xf32>, i32 -> vector<128x8xf32>
    %c1_i32_3 = arith.constant 1 : i32
    %12 = vector.broadcast %c1_i32_3 : i32 to vector<128x8xi32>
    %13 = arith.cmpi slt, %2, %12 : vector<128x8xi32>
    %14 = vector.shape_cast %3 : vector<1x8xf32> to vector<1x8xf32>
    %15 = vector.broadcast %14 : vector<1x8xf32> to vector<128x8xf32>
    %16 = arith.select %13, %15, %11 : vector<128x8xi1>, vector<128x8xf32>
    %17 = arith.addf %1, %10 : vector<128x8xf32>
    %18 = arith.addf %17, %16 : vector<128x8xf32>
    %c126_i32 = arith.constant 126 : i32
    %19 = tpu.dynamic_rotate %1 by %c126_i32 dim 0 : vector<128x8xf32>, i32 -> vector<128x8xf32>
    %c126_i32_4 = arith.constant 126 : i32
    %20 = vector.broadcast %c126_i32_4 : i32 to vector<128x8xi32>
    %21 = arith.cmpi sge, %2, %20 : vector<128x8xi32>
    %22 = vector.shape_cast %4 : vector<1x8xf32> to vector<1x8xf32>
    %23 = vector.broadcast %22 : vector<1x8xf32> to vector<128x8xf32>
    %24 = arith.select %21, %23, %19 : vector<128x8xi1>, vector<128x8xf32>
    %c2_i32 = arith.constant 2 : i32
    %25 = tpu.dynamic_rotate %1 by %c2_i32 dim 0 : vector<128x8xf32>, i32 -> vector<128x8xf32>
    %c2_i32_5 = arith.constant 2 : i32
    %26 = vector.broadcast %c2_i32_5 : i32 to vector<128x8xi32>
    %27 = arith.cmpi slt, %2, %26 : vector<128x8xi32>
    %28 = vector.shape_cast %3 : vector<1x8xf32> to vector<1x8xf32>
    %29 = vector.broadcast %28 : vector<1x8xf32> to vector<128x8xf32>
    %30 = arith.select %27, %29, %25 : vector<128x8xi1>, vector<128x8xf32>
    %31 = arith.addf %18, %24 : vector<128x8xf32>
    %32 = arith.addf %31, %30 : vector<128x8xf32>
    %cst = arith.constant 2.000000e-01 : f32
    %33 = vector.broadcast %cst : f32 to vector<128x8xf32>
    %34 = arith.mulf %32, %33 : vector<128x8xf32>
    %c0_6 = arith.constant 0 : index
    %c0_7 = arith.constant 0 : index
    %c0_8 = arith.constant 0 : index
    %35 = vector.load %arg4[%c0_6, %c0_7, %c0_8] : memref<1x128x8xf32, #tpu.memory_space<vmem>>, vector<1x128x8xf32>
    %36 = vector.shape_cast %35 : vector<1x128x8xf32> to vector<128x8xf32>
    %37 = vector.shape_cast %34 : vector<128x8xf32> to vector<1x128x8xf32>
    tpu.vector_store %arg4[%c0_6, %c0_7, %c0_8], %37 {strides = array<i32>} : memref<1x128x8xf32, #tpu.memory_space<vmem>>, vector<1x128x8xf32>,
    %38 = arith.subf %1, %34 : vector<128x8xf32>
    %c0_9 = arith.constant 0 : index
    %c0_10 = arith.constant 0 : index
    %c0_11 = arith.constant 0 : index
    %39 = vector.load %arg3[%c0_9, %c0_10, %c0_11] : memref<1x128x8xf32, #tpu.memory_space<vmem>>, vector<1x128x8xf32>
    %40 = vector.shape_cast %39 : vector<1x128x8xf32> to vector<128x8xf32>
    %41 = vector.shape_cast %38 : vector<128x8xf32> to vector<1x128x8xf32>
    tpu.vector_store %arg3[%c0_9, %c0_10, %c0_11], %41 {strides = array<i32>} : memref<1x128x8xf32, #tpu.memory_space<vmem>>, vector<1x128x8xf32>,
    return
  }
  func.func @transform_0(%arg0: i32, %arg1: i32) -> (i32, i32, i32) {
    %c0_i32 = arith.constant 0 : i32
    %c0_i32_0 = arith.constant 0 : i32
    return %arg0, %c0_i32, %arg1 : i32, i32, i32
  }
  func.func @transform_1(%arg0: i32, %arg1: i32) -> (i32, i32, i32) {
    %c0_i32 = arith.constant 0 : i32
    %c0_i32_0 = arith.constant 0 : i32
    return %arg0, %c0_i32, %arg1 : i32, i32, i32
  }
  func.func @transform_2(%arg0: i32, %arg1: i32) -> (i32, i32, i32) {
    %c0_i32 = arith.constant 0 : i32
    %c0_i32_0 = arith.constant 0 : i32
    return %arg0, %c0_i32, %arg1 : i32, i32, i32
  }
}

</mosaic_0001>

<bundles_post_ra>
// kernel: tpu_custom_call.1
= control target key start
LH: loop header
LB: loop body
LE: loop exit
PB: predicated region body
PF: predicated region fallthrough
CT: control target
= control target key end

     0   :  { %s833_s9 = smov 0   ;;  %s835_s10 = smov 0   ;;  %s1301_s0 = inlined_call_operand.vmem [shape: f32[2,128,8], index: 0, kind: input, shape index: {}]   ;;  %s1302_s1 = inlined_call_operand.vmem [shape: f32[2,128,8], index: 1, kind: output, shape index: {0}]   ;;  %s1303_s2 = inlined_call_operand.vmem [shape: f32[2,128,8], index: 2, kind: output, shape index: {1}]  }
   0x1   :  { %s837_s11 = smov 0  }
   0x2 LB: > { %s25_s12 = sadd.s32 1, %s812_s10  ;;  %p758_p0 = scmp.ge.s32.totalorder %s816_s11, 1  ;;  %s816_s11 = sphi %s837_s11, %s13_s11   ;;  %s812_s10 = sphi %s835_s10, %s1305_s10   ;;  %s808_s9 = sphi %s833_s9, %s1304_s9  }
   0x3   : > { %p27_p1 = scmp.ge.s32.totalorder %s25_s12, 2  ;;  %p136_p2 = scmp.lt.s32.totalorder %s816_s11, 3 }
   0x5   : > { %s1307_s12 = smov (%p27_p1, %s25_s12), 0  ;;  %p137_p3 = pnand %p758_p0, %p136_p2 }
   0x6   : > { %p172_p4 = scmp.lt.s32.totalorder (!%p137_p3), %s808_s9, 1  ;;  %v212_v0 = vlaneseq (!%p137_p3)  ;;  %vm575_vm4 = vcmask (!%p137_p3), 64512  }
   0x7   : > { %140 = sbr.rel (%p137_p3) target bundleno = 82 (0x52), region = 24 }
   0x8   : > { %v851_v1 = vshrl.u32 (!%p137_p3), %v212_v0, 7 }
   0xa   : > { %v348_v2 = vsub.s32 (!%p137_p3), 0, %v851_v1  ;;  %vm245_vm0 = vcmp.lt.s32.totalorder (!%p137_p3), %v851_v1, 7  ;;  %vm314_vm1 = vcmp.lt.s32.totalorder (!%p137_p3), %v851_v1, 1  ;;  %vm414_vm2 = vcmp.lt.s32.totalorder (!%p137_p3), %v851_v1, 6 }
   0xb   : > { %vm479_vm3 = vcmp.lt.s32.totalorder (!%p137_p3), %v851_v1, 2  ;;  %v876_v6 = vadd.s32 (!%p137_p3), 120, %v851_v1  ;;  %v280_v7 = vsub.s32 (!%p137_p3), 7, %v851_v1 }
   0xd   : > { %vm277_vm5 = vcmp.ge.s32.totalorder (!%p137_p3), %v876_v6, 127  ;;  %vm446_vm6 = vcmp.ge.s32.totalorder (!%p137_p3), %v876_v6, 126 }
   0xe   : > { %s1309_s9 = smov (!%p172_p4, %s808_s9), 1 }
   0xf   : > { %s853_s13 = sshll.u32 %s1309_s9, 7 }
  0x10   : > { %s860_s16 = scalar_lea.vmem %s1301_s0, %s853_s13  ;;  %s951_s19 = scalar_lea.vmem %s1303_s2, %s853_s13 }
  0x11   : > { %v866_v3 = vld [vmem:[%s860_s16] sm:$0xff]  ;;  %v869_v4 = vld [vmem:[%s860_s16 + $0x8] sm:$0xff]  ;;  %v872_v5 = vld [vmem:[%s860_s16 + $0x78] sm:$0xff]  ;;  %s1223_s22 = scalar_lea.vmem %s1302_s1, %s853_s13 }
  0x12   : > { %v229_v8 = vrot.slane %v866_v3, 1  ;;  %v230_v9 = vrot.slane %v869_v4, 1  ;;  %v298_v10 = vrot.slane %v866_v3, 7  ;;  %v313_v11 = vrot.slane %v872_v5, 7  ;;  %v884_v12 = vld [vmem:[%s860_s16 + $0x10] sm:$0xff]  ;;  %v909_v25 = vld [vmem:[%s860_s16 + $0x18] sm:$0xff] }
  0x13   : > { %v349_v13 = vrot.slane %v866_v3, %v348_v2  ;;  %v398_v14 = vrot.slane %v866_v3, 2  ;;  %v399_v15 = vrot.slane %v869_v4, 2  ;;  %v463_v16 = vrot.slane %v866_v3, 6  ;;  %v925_v34 = vld [vmem:[%s860_s16 + $0x20] sm:$0xff]  ;;  %v945_v51 = vld [vmem:[%s860_s16 + $0x28] sm:$0xff] }
  0x14   : > { %v260_v17 = vsel %vm245_vm0, %v229_v8, %v230_v9  ;;  %v330_v18 = vsel %vm314_vm1, %v313_v11, %v298_v10  ;;  %v478_v19 = vrot.slane %v872_v5, 6  ;;  %v231_v20 = vrot.slane %v884_v12, 1 }
  0x15   : > { %v350_v21 = vsel %vm314_vm1, %v349_v13, %v330_v18  ;;  %v366_v22 = vadd.f32 %v260_v17, %v866_v3  ;;  %v429_v23 = vsel %vm414_vm2, %v398_v14, %v399_v15  ;;  %v299_v24 = vrot.slane %v869_v4, 7 }
  0x16   : > { %v495_v26 = vsel %vm479_vm3, %v478_v19, %v463_v16  ;;  %v259_v27 = vsel %vm245_vm0, %v230_v9, %v231_v20  ;;  %v400_v28 = vrot.slane %v884_v12, 2  ;;  %v464_v29 = vrot.slane %v869_v4, 6 }
  0x17   : > { %v382_v30 = vadd.f32 %v366_v22, %v350_v21  ;;  %v511_v31 = vsel %vm479_vm3, %v349_v13, %v495_v26  ;;  %v329_v32 = vsel %vm314_vm1, %v298_v10, %v299_v24  ;;  %v367_v33 = vadd.f32 %v259_v27, %v869_v4  ;;  %v975_v13 = vld [vmem:[%s860_s16 + $0x30] sm:$0xff] }
  0x18   : > { %v428_v35 = vsel %vm414_vm2, %v399_v15, %v400_v28  ;;  %v494_v36 = vsel %vm479_vm3, %v463_v16, %v464_v29  ;;  %v232_v37 = vrot.slane %v909_v25, 1  ;;  %v300_v38 = vrot.slane %v884_v12, 7 }
  0x19   : > { %v527_v39 = vadd.f32 %v429_v23, %v382_v30  ;;  %v383_v40 = vadd.f32 %v367_v33, %v329_v32  ;;  %v401_v41 = vrot.slane %v909_v25, 2  ;;  %v465_v42 = vrot.slane %v884_v12, 6 }
  0x1a   : > { %v258_v43 = vsel %vm245_vm0, %v231_v20, %v232_v37  ;;  %v328_v44 = vsel %vm314_vm1, %v299_v24, %v300_v38  ;;  %v233_v45 = vrot.slane %v925_v34, 1  ;;  %v301_v46 = vrot.slane %v909_v25, 7  ;;  %v991_v24 = vld [vmem:[%s860_s16 + $0x38] sm:$0xff] }
  0x1b   : > { %v543_v47 = vadd.f32 %v527_v39, %v511_v31  ;;  %v528_v48 = vadd.f32 %v428_v35, %v383_v40  ;;  %v368_v49 = vadd.f32 %v258_v43, %v884_v12  ;;  %v427_v50 = vsel %vm414_vm2, %v400_v28, %v401_v41  ;;  %v1009_v39 = vld [vmem:[%s860_s16 + $0x40] sm:$0xff] }
  0x1c   : > { %v493_v52 = vsel %vm479_vm3, %v464_v29, %v465_v42  ;;  %v257_v53 = vsel %vm245_vm0, %v232_v37, %v233_v45  ;;  %v327_v54 = vsel %vm314_vm1, %v300_v38, %v301_v46  ;;  %v402_v55 = vrot.slane %v925_v34, 2 }
  0x1d   : > { %v960_v56 = vmul.f32 0.2, %v543_v47  ;;  %v544_v57 = vadd.f32 %v528_v48, %v494_v36  ;;  %v384_v58 = vadd.f32 %v368_v49, %v328_v44  ;;  %v369_v59 = vadd.f32 %v257_v53, %v909_v25 }
  0x1e   : > { %v426_v60 = vsel %vm414_vm2, %v401_v41, %v402_v55  ;;  %v466_v61 = vrot.slane %v909_v25, 6  ;;  %v234_v62 = vrot.slane %v945_v51, 1  ;;  %v302_v63 = vrot.slane %v925_v34, 7 }
  0x1f   : > { %576 = vst.msk [vmem:[%s951_s19] sm:$0xff] %vm575_vm4, %v960_v56  ;;  %v971_v0 = vmul.f32 0.2, %v544_v57  ;;  %v529_v2 = vadd.f32 %v427_v50, %v384_v58  ;;  %v385_v9 = vadd.f32 %v369_v59, %v327_v54  ;;  %v403_v10 = vrot.slane %v945_v51, 2  ;;  %v1037_v58 = vld [vmem:[%s860_s16 + $0x48] sm:$0xff] }
  0x20   : > { %v492_v15 = vsel %vm479_vm3, %v465_v42, %v466_v61  ;;  %v256_v16 = vsel %vm245_vm0, %v233_v45, %v234_v62  ;;  %v326_v17 = vsel %vm314_vm1, %v301_v46, %v302_v63  ;;  %v467_v18 = vrot.slane %v925_v34, 6 }
  0x21   : > { %577 = vst.msk [vmem:[%s951_s19 + $0x8] sm:$0xff] %vm575_vm4, %v971_v0  ;;  %v545_v20 = vadd.f32 %v529_v2, %v493_v52  ;;  %v530_v21 = vadd.f32 %v426_v60, %v385_v9  ;;  %v370_v22 = vadd.f32 %v256_v16, %v925_v34  ;;  %v425_v23 = vsel %vm414_vm2, %v402_v55, %v403_v10 }
  0x22   : > { %v491_v26 = vsel %vm479_vm3, %v466_v61, %v467_v18  ;;  %v235_v27 = vrot.slane %v975_v13, 1  ;;  %v303_v28 = vrot.slane %v945_v51, 7  ;;  %v404_v29 = vrot.slane %v975_v13, 2 }
  0x23   : > { %v998_v30 = vmul.f32 0.2, %v545_v20  ;;  %v546_v31 = vadd.f32 %v530_v21, %v492_v15  ;;  %v386_v32 = vadd.f32 %v370_v22, %v326_v17  ;;  %v468_v33 = vrot.slane %v945_v51, 6 }
  0x24   : > { %v255_v35 = vsel %vm245_vm0, %v234_v62, %v235_v27  ;;  %v325_v36 = vsel %vm314_vm1, %v302_v63, %v303_v28  ;;  %v424_v37 = vsel %vm414_vm2, %v403_v10, %v404_v29  ;;  %v236_v38 = vrot.slane %v991_v24, 1 }
  0x25   : > { %578 = vst.msk [vmem:[%s951_s19 + $0x10] sm:$0xff] %vm575_vm4, %v998_v30  ;;  %v1014_v40 = vmul.f32 0.2, %v546_v31  ;;  %v531_v41 = vadd.f32 %v425_v23, %v386_v32  ;;  %v371_v42 = vadd.f32 %v255_v35, %v945_v51  ;;  %v490_v43 = vsel %vm479_vm3, %v467_v18, %v468_v33 }
  0x26   : > { %v254_v44 = vsel %vm245_vm0, %v235_v27, %v236_v38  ;;  %v304_v45 = vrot.slane %v975_v13, 7  ;;  %v405_v46 = vrot.slane %v991_v24, 2  ;;  %v469_v47 = vrot.slane %v975_v13, 6 }
  0x27   : > { %579 = vst.msk [vmem:[%s951_s19 + $0x18] sm:$0xff] %vm575_vm4, %v1014_v40  ;;  %v547_v48 = vadd.f32 %v531_v41, %v491_v26  ;;  %v387_v49 = vadd.f32 %v371_v42, %v325_v36  ;;  %v372_v50 = vadd.f32 %v254_v44, %v975_v13  ;;  %v237_v52 = vrot.slane %v1009_v39, 1  ;;  %v1059_v26 = vld [vmem:[%s860_s16 + $0x50] sm:$0xff] }
  0x28   : > { %v324_v53 = vsel %vm314_vm1, %v303_v28, %v304_v45  ;;  %v423_v54 = vsel %vm414_vm2, %v404_v29, %v405_v46  ;;  %v489_v55 = vsel %vm479_vm3, %v468_v33, %v469_v47  ;;  %v305_v57 = vrot.slane %v991_v24, 7 }
  0x29   : > { %v1039_v59 = vmul.f32 0.2, %v547_v48  ;;  %v532_v60 = vadd.f32 %v424_v37, %v387_v49  ;;  %v388_v61 = vadd.f32 %v372_v50, %v324_v53  ;;  %v253_v62 = vsel %vm245_vm0, %v236_v38, %v237_v52  ;;  %v1072_v37 = vld [vmem:[%s860_s16 + $0x58] sm:$0xff]  ;;  %v1096_v53 = vld [vmem:[%s860_s16 + $0x60] sm:$0xff] }
  0x2a   : > { %v323_v63 = vsel %vm314_vm1, %v304_v45, %v305_v57  ;;  %v373_v2 = vadd.f32 %v253_v62, %v991_v24  ;;  %v406_v9 = vrot.slane %v1009_v39, 2  ;;  %v470_v10 = vrot.slane %v991_v24, 6 }
  0x2b   : > { %580 = vst.msk [vmem:[%s951_s19 + $0x20] sm:$0xff] %vm575_vm4, %v1039_v59  ;;  %v548_v15 = vadd.f32 %v532_v60, %v490_v43  ;;  %v533_v16 = vadd.f32 %v423_v54, %v388_v61  ;;  %v238_v17 = vrot.slane %v1037_v58, 1  ;;  %v306_v18 = vrot.slane %v1009_v39, 7 }
  0x2c   : > { %v389_v20 = vadd.f32 %v373_v2, %v323_v63  ;;  %v422_v21 = vsel %vm414_vm2, %v405_v46, %v406_v9  ;;  %v488_v22 = vsel %vm479_vm3, %v469_v47, %v470_v10  ;;  %v407_v23 = vrot.slane %v1037_v58, 2 }
  0x2d   : > { %v1061_v27 = vmul.f32 0.2, %v548_v15  ;;  %v549_v28 = vadd.f32 %v533_v16, %v489_v55  ;;  %v252_v29 = vsel %vm245_vm0, %v237_v52, %v238_v17  ;;  %v322_v31 = vsel %vm314_vm1, %v305_v57, %v306_v18 }
  0x2e   : > { %v534_v32 = vadd.f32 %v422_v21, %v389_v20  ;;  %v374_v33 = vadd.f32 %v252_v29, %v1009_v39  ;;  %v421_v35 = vsel %vm414_vm2, %v406_v9, %v407_v23  ;;  %v471_v36 = vrot.slane %v1009_v39, 6 }
  0x2f   : > { %581 = vst.msk [vmem:[%s951_s19 + $0x28] sm:$0xff] %vm575_vm4, %v1061_v27  ;;  %v1077_v38 = vmul.f32 0.2, %v549_v28  ;;  %v239_v41 = vrot.slane %v1059_v26, 1  ;;  %v307_v42 = vrot.slane %v1037_v58, 7  ;;  %v408_v43 = vrot.slane %v1059_v26, 2 }
  0x30   : > { %v550_v44 = vadd.f32 %v534_v32, %v488_v22  ;;  %v390_v45 = vadd.f32 %v374_v33, %v322_v31  ;;  %v487_v46 = vsel %vm479_vm3, %v470_v10, %v471_v36  ;;  %v472_v47 = vrot.slane %v1037_v58, 6  ;;  %v1121_v22 = vld [vmem:[%s860_s16 + $0x68] sm:$0xff] }
  0x31   : > { %582 = vst.msk [vmem:[%s951_s19 + $0x30] sm:$0xff] %vm575_vm4, %v1077_v38  ;;  %v251_v48 = vsel %vm245_vm0, %v238_v17, %v239_v41  ;;  %v321_v49 = vsel %vm314_vm1, %v306_v18, %v307_v42  ;;  %v420_v50 = vsel %vm414_vm2, %v407_v23, %v408_v43  ;;  %v240_v52 = vrot.slane %v1072_v37, 1 }
  0x32   : > { %v1098_v54 = vmul.f32 0.2, %v550_v44  ;;  %v535_v55 = vadd.f32 %v421_v35, %v390_v45  ;;  %v375_v57 = vadd.f32 %v251_v48, %v1037_v58  ;;  %v486_v60 = vsel %vm479_vm3, %v471_v36, %v472_v47 }
  0x33   : > { %v250_v61 = vsel %vm245_vm0, %v239_v41, %v240_v52  ;;  %v308_v62 = vrot.slane %v1059_v26, 7  ;;  %v409_v63 = vrot.slane %v1072_v37, 2  ;;  %v473_v2 = vrot.slane %v1059_v26, 6 }
  0x34   : > { %583 = vst.msk [vmem:[%s951_s19 + $0x38] sm:$0xff] %vm575_vm4, %v1098_v54  ;;  %v551_v9 = vadd.f32 %v535_v55, %v487_v46  ;;  %v391_v10 = vadd.f32 %v375_v57, %v321_v49  ;;  %v376_v15 = vadd.f32 %v250_v61, %v1059_v26  ;;  %v241_v16 = vrot.slane %v1096_v53, 1  ;;  %v1143_v49 = vld [vmem:[%s860_s16 + $0x70] sm:$0xff] }
  0x35   : > { %v320_v17 = vsel %vm314_vm1, %v307_v42, %v308_v62  ;;  %v419_v18 = vsel %vm414_vm2, %v408_v43, %v409_v63  ;;  %v485_v20 = vsel %vm479_vm3, %v472_v47, %v473_v2  ;;  %v309_v21 = vrot.slane %v1072_v37, 7 }
  0x36   : > { %v1123_v23 = vmul.f32 0.2, %v551_v9  ;;  %v536_v28 = vadd.f32 %v420_v50, %v391_v10  ;;  %v392_v29 = vadd.f32 %v376_v15, %v320_v17  ;;  %v249_v31 = vsel %vm245_vm0, %v240_v52, %v241_v16 }
  0x37   : > { %v319_v32 = vsel %vm314_vm1, %v308_v62, %v309_v21  ;;  %v377_v33 = vadd.f32 %v249_v31, %v1072_v37  ;;  %v410_v35 = vrot.slane %v1096_v53, 2  ;;  %v474_v36 = vrot.slane %v1072_v37, 6 }
  0x38   : > { %584 = vst.msk [vmem:[%s951_s19 + $0x40] sm:$0xff] %vm575_vm4, %v1123_v23  ;;  %v552_v41 = vadd.f32 %v536_v28, %v486_v60  ;;  %v537_v42 = vadd.f32 %v419_v18, %v392_v29  ;;  %v242_v43 = vrot.slane %v1121_v22, 1  ;;  %v310_v44 = vrot.slane %v1096_v53, 7 }
  0x39   : > { %v393_v45 = vadd.f32 %v377_v33, %v319_v32  ;;  %v418_v46 = vsel %vm414_vm2, %v409_v63, %v410_v35  ;;  %v484_v47 = vsel %vm479_vm3, %v473_v2, %v474_v36  ;;  %v411_v48 = vrot.slane %v1121_v22, 2 }
  0x3a   : > { %v1145_v50 = vmul.f32 0.2, %v552_v41  ;;  %v553_v52 = vadd.f32 %v537_v42, %v485_v20  ;;  %v248_v55 = vsel %vm245_vm0, %v241_v16, %v242_v43  ;;  %v318_v57 = vsel %vm314_vm1, %v309_v21, %v310_v44 }
  0x3b   : > { %v538_v60 = vadd.f32 %v418_v46, %v393_v45  ;;  %v378_v61 = vadd.f32 %v248_v55, %v1096_v53  ;;  %v417_v62 = vsel %vm414_vm2, %v410_v35, %v411_v48  ;;  %v475_v63 = vrot.slane %v1096_v53, 6 }
  0x3c   : > { %585 = vst.msk [vmem:[%s951_s19 + $0x48] sm:$0xff] %vm575_vm4, %v1145_v50  ;;  %v1158_v2 = vmul.f32 0.2, %v553_v52  ;;  %v243_v9 = vrot.slane %v1143_v49, 1  ;;  %v311_v10 = vrot.slane %v1121_v22, 7  ;;  %v412_v15 = vrot.slane %v1143_v49, 2 }
  0x3d   : > { %v554_v16 = vadd.f32 %v538_v60, %v484_v47  ;;  %v394_v17 = vadd.f32 %v378_v61, %v318_v57  ;;  %v483_v18 = vsel %vm479_vm3, %v474_v36, %v475_v63  ;;  %v476_v20 = vrot.slane %v1121_v22, 6 }
  0x3e   : > { %586 = vst.msk [vmem:[%s951_s19 + $0x50] sm:$0xff] %vm575_vm4, %v1158_v2  ;;  %v247_v21 = vsel %vm245_vm0, %v242_v43, %v243_v9  ;;  %v317_v28 = vsel %vm314_vm1, %v310_v44, %v311_v10  ;;  %v416_v29 = vsel %vm414_vm2, %v411_v48, %v412_v15  ;;  %v244_v31 = vrot.slane %v872_v5, 1 }
  0x3f   : > { %v1176_v32 = vmul.f32 0.2, %v554_v16  ;;  %v539_v33 = vadd.f32 %v417_v62, %v394_v17  ;;  %v379_v35 = vadd.f32 %v247_v21, %v1121_v22  ;;  %v482_v36 = vsel %vm479_vm3, %v475_v63, %v476_v20 }
  0x40   : > { %v246_v41 = vsel %vm245_vm0, %v243_v9, %v244_v31  ;;  %v312_v42 = vrot.slane %v1143_v49, 7  ;;  %v413_v43 = vrot.slane %v872_v5, 2  ;;  %v477_v44 = vrot.slane %v1143_v49, 6 }
  0x41   : > { %587 = vst.msk [vmem:[%s951_s19 + $0x58] sm:$0xff] %vm575_vm4, %v1176_v32  ;;  %v555_v45 = vadd.f32 %v539_v33, %v483_v18  ;;  %v395_v46 = vadd.f32 %v379_v35, %v317_v28  ;;  %v380_v47 = vadd.f32 %v246_v41, %v1143_v49  ;;  %v261_v48 = vsel %vm245_vm0, %v244_v31, %v229_v8 }
  0x42   : > { %v316_v52 = vsel %vm314_vm1, %v311_v10, %v312_v42  ;;  %v415_v55 = vsel %vm414_vm2, %v412_v15, %v413_v43  ;;  %v481_v57 = vsel %vm479_vm3, %v476_v20, %v477_v44  ;;  %v281_v63 = vrot.slane %v872_v5, %v280_v7 }
  0x43   : > { %v571_v60 = vmul.f32 0.2, %v555_v45  ;;  %v540_v61 = vadd.f32 %v416_v29, %v395_v46  ;;  %v396_v62 = vadd.f32 %v380_v47, %v316_v52  ;;  %v315_v8 = vsel %vm314_vm1, %v312_v42, %v313_v11 }
  0x44   : > { %v430_v9 = vsel %vm414_vm2, %v413_v43, %v398_v14  ;;  %v480_v10 = vsel %vm479_vm3, %v477_v44, %v478_v19  ;;  %v297_v16 = vsel %vm277_vm5, %v281_v63, %v261_v48  ;;  %v592_v1 = vsub.f32 %v866_v3, %v960_v56 }
  0x45   : > { %588 = vst.msk [vmem:[%s951_s19 + $0x60] sm:$0xff] %vm575_vm4, %v571_v60  ;;  %v556_v7 = vadd.f32 %v540_v61, %v482_v36  ;;  %v541_v15 = vadd.f32 %v415_v55, %v396_v62  ;;  %v462_v17 = vsel %vm446_vm6, %v281_v63, %v430_v9  ;;  %v381_v6 = vadd.f32 %v297_v16, %v872_v5 }
  0x46   : > { %v593_v11 = vsub.f32 %v869_v4, %v971_v0  ;;  %v594_v14 = vsub.f32 %v884_v12, %v998_v30  ;;  %v595_v20 = vsub.f32 %v909_v25, %v1014_v40  ;;  %v596_v21 = vsub.f32 %v925_v34, %v1039_v59  ;;  %608 = vst.msk [vmem:[%s1223_s22] sm:$0xff] %vm575_vm4, %v592_v1 }
  0x47   : > { %v572_v19 = vmul.f32 0.2, %v556_v7  ;;  %v557_v18 = vadd.f32 %v541_v15, %v481_v57  ;;  %v397_v28 = vadd.f32 %v381_v6, %v315_v8  ;;  %v597_v3 = vsub.f32 %v945_v51, %v1061_v27 }
  0x48   : > { %609 = vst.msk [vmem:[%s1223_s22 + $0x8] sm:$0xff] %vm575_vm4, %v593_v11  ;;  %610 = vst.msk [vmem:[%s1223_s22 + $0x10] sm:$0xff] %vm575_vm4, %v594_v14  ;;  %v598_v4 = vsub.f32 %v975_v13, %v1077_v38  ;;  %v599_v12 = vsub.f32 %v991_v24, %v1098_v54  ;;  %v600_v34 = vsub.f32 %v1009_v39, %v1123_v23 }
  0x49   : > { %589 = vst.msk [vmem:[%s951_s19 + $0x68] sm:$0xff] %vm575_vm4, %v572_v19  ;;  %v573_v25 = vmul.f32 0.2, %v557_v18  ;;  %611 = vst.msk [vmem:[%s1223_s22 + $0x18] sm:$0xff] %vm575_vm4, %v595_v20  ;;  %v601_v51 = vsub.f32 %v1037_v58, %v1145_v50  ;;  %v602_v56 = vsub.f32 %v1059_v26, %v1158_v2  ;;  %v542_v0 = vadd.f32 %v462_v17, %v397_v28 }
  0x4a   : > { %612 = vst.msk [vmem:[%s1223_s22 + $0x20] sm:$0xff] %vm575_vm4, %v596_v21  ;;  %613 = vst.msk [vmem:[%s1223_s22 + $0x28] sm:$0xff] %vm575_vm4, %v597_v3  ;;  %v603_v13 = vsub.f32 %v1072_v37, %v1176_v32  ;;  %v604_v24 = vsub.f32 %v1096_v53, %v571_v60  ;;  %v605_v30 = vsub.f32 %v1121_v22, %v572_v19 }
  0x4b   : > { %614 = vst.msk [vmem:[%s1223_s22 + $0x30] sm:$0xff] %vm575_vm4, %v598_v4  ;;  %615 = vst.msk [vmem:[%s1223_s22 + $0x38] sm:$0xff] %vm575_vm4, %v599_v12  ;;  %v606_v39 = vsub.f32 %v1143_v49, %v573_v25  ;;  %v558_v40 = vadd.f32 %v542_v0, %v480_v10 }
  0x4c   : > { %590 = vst.msk [vmem:[%s951_s19 + $0x70] sm:$0xff] %vm575_vm4, %v573_v25  ;;  %616 = vst.msk [vmem:[%s1223_s22 + $0x40] sm:$0xff] %vm575_vm4, %v600_v34 }
  0x4d   : > { %617 = vst.msk [vmem:[%s1223_s22 + $0x48] sm:$0xff] %vm575_vm4, %v601_v51  ;;  %618 = vst.msk [vmem:[%s1223_s22 + $0x50] sm:$0xff] %vm575_vm4, %v602_v56  ;;  %v574_v58 = vmul.f32 0.2, %v558_v40 }
  0x4e   : > { %619 = vst.msk [vmem:[%s1223_s22 + $0x58] sm:$0xff] %vm575_vm4, %v603_v13  ;;  %620 = vst.msk [vmem:[%s1223_s22 + $0x60] sm:$0xff] %vm575_vm4, %v604_v24 }
  0x4f   : > { %621 = vst.msk [vmem:[%s1223_s22 + $0x68] sm:$0xff] %vm575_vm4, %v605_v30  ;;  %622 = vst.msk [vmem:[%s1223_s22 + $0x70] sm:$0xff] %vm575_vm4, %v606_v39  ;;  %v607_v59 = vsub.f32 %v872_v5, %v574_v58 }
  0x50   : > { %591 = vst.msk [vmem:[%s951_s19 + $0x78] sm:$0xff] %vm575_vm4, %v574_v58 }
  0x51   : > { %623 = vst.msk [vmem:[%s1223_s22 + $0x78] sm:$0xff] %vm575_vm4, %v607_v59 }
  0x52 PF: > { %s13_s11 = sadd.s32 1, %s816_s11   ;;  %s1304_s9 = smov %s812_s10 }
  0x53   : > { %p10_p5 = scmp.ge.s32.totalorder %s13_s11, 4   ;;  %s1305_s10 = smov %s1307_s12 }
  0x55   :  { %12 = sbr.rel (!%p10_p5) target bundleno = 2 (0x2), region = 66 }

</bundles_post_ra>
